<compile_context>
chip_gen: v5e
topology: v5e:2x2
jax: 0.10.0
libtpu: 0.0.40
codegen_flags: <defaults>
</compile_context>

<pallas_src>
import functools

import jax
import jax.numpy as jnp
from jax.experimental import pallas as pl
from jax.experimental.pallas import tpu as pltpu

KH = KW = 3
PAD = 1
STRIDE = 1  # kernel assumes 3x3 / stride 1 / pad 1 (the module's kwargs here)


def _conv_stats_kernel(x_ref, w_ref, y_ref, s_ref, xp_ref):
    """One batch item: 3x3 conv as 3 row-shifted lane-dense matmuls against
    Toeplitz-expanded weights, plus per-block partial BN statistics.

    x_ref : (H, W*C_in)           bf16  lane-dense input rows of this batch item
    w_ref : (KH, W*C_in, W*C_out) bf16  Toeplitz weights (width padding folded in)
    y_ref : (H, W*C_out)          f32   lane-dense conv output (128-lane stores)
    s_ref : (1, 2, W*C_out)       f32   per-block partial sum / sum-of-squares
    xp_ref: (H + 2*PAD, W*C_in)   f32   VMEM scratch holding the row-padded input
    """
    h_out, wc_out = y_ref.shape
    wc_in = x_ref.shape[1]

    # Row (top/bottom) zero padding is materialized only in VMEM; only the two
    # boundary rows are zeroed (static offsets), the interior is overwritten.
    xp_ref[pl.ds(0, PAD), :] = jnp.zeros((PAD, wc_in), jnp.float32)
    xp_ref[pl.ds(PAD + h_out, PAD), :] = jnp.zeros((PAD, wc_in), jnp.float32)
    xp_ref[pl.ds(PAD, h_out), :] = x_ref[...].astype(jnp.float32)

    # out[h, w*Cout+co] = sum_kh  xp[h+kh, :] @ B[kh]   (3 MXU matmuls, f32 acc)
    acc = jnp.zeros((h_out, wc_out), jnp.float32)
    for kh in range(KH):  # static trip count -> fully unrolled at trace time
        xs = xp_ref[pl.ds(kh, h_out), :].astype(jnp.bfloat16)
        acc = acc + jnp.dot(xs, w_ref[kh], preferred_element_type=jnp.float32)

    y_ref[...] = acc  # (16, 128): unmasked, lane-dense stores

    # Lane-dense per-block partial stats (reduced over rows only). The tiny
    # cross-batch / cross-width reduction happens in the JAX epilogue, so the
    # grid has no sequential accumulator and stays fully parallel.
    s_ref[...] = jnp.concatenate(
        [jnp.sum(acc, axis=0, keepdims=True),
         jnp.sum(acc * acc, axis=0, keepdims=True)], axis=0)[None]


def _toeplitz_weights(w_oihw, width):
    """(C_out, C_in, 3, 3) -> (KH, W*C_in, W*C_out) conv-as-matmul weights.

    B[kh, q*C_in + ci, w*C_out + co] = W[co, ci, kh, q - w + PAD]
    (zero when q - w + PAD is outside [0, KW)), i.e. the convolution's
    left/right zero padding is folded into the weight matrix.
    """
    c_out, c_in, _, _ = w_oihw.shape
    w_hwio = jnp.transpose(w_oihw, (2, 3, 1, 0)).astype(jnp.float32)  # (KH,KW,Ci,Co)
    shift = jnp.stack([jnp.eye(width, k=PAD - kk, dtype=jnp.float32)
                       for kk in range(KW)])                           # (KW, W, W)
    b = jnp.einsum("kqw,hkio->hqiwo", shift, w_hwio)  # (KH, W, C_in, W, C_out)
    return b.reshape(KH, width * c_in, width * c_out)


@functools.partial(jax.jit, static_argnames=("eps",))
def basic_conv_forward(x_nchw, w_oihw, gamma, beta, eps=1e-5):
    n, c_in, h, width = x_nchw.shape
    c_out = w_oihw.shape[0]
    assert w_oihw.shape == (c_out, c_in, KH, KW), "kernel assumes 3x3/stride1/pad1"
    h_out, w_out = h, width  # stride 1, pad 1

    # NCHW -> lane-dense (N*H, W*C_in) rows, bf16 at the kernel boundary.
    # (XLA fuses transpose + reshape + cast into a single pass over x.)
    x_rows = jnp.transpose(x_nchw, (0, 2, 3, 1)).reshape(n * h, width * c_in)
    x_rows = x_rows.astype(jnp.bfloat16)
    w_toe = _toeplitz_weights(w_oihw, width).astype(jnp.bfloat16)

    y_rows, stats = pl.pallas_call(
        _conv_stats_kernel,
        out_shape=(
            jax.ShapeDtypeStruct((n * h_out, w_out * c_out), jnp.float32),
            jax.ShapeDtypeStruct((n, 2, w_out * c_out), jnp.float32),
        ),
        grid=(n,),
        in_specs=[
            pl.BlockSpec((h, width * c_in), lambda b: (b, 0)),
            # Constant block index -> weights stay resident in VMEM across steps.
            pl.BlockSpec((KH, width * c_in, w_out * c_out), lambda b: (0, 0, 0)),
        ],
        out_specs=(
            pl.BlockSpec((h_out, w_out * c_out), lambda b: (b, 0)),
            pl.BlockSpec((1, 2, w_out * c_out), lambda b: (b, 0, 0)),
        ),
        scratch_shapes=[pltpu.VMEM((h + 2 * PAD, width * c_in), jnp.float32)],
        compiler_params=pltpu.CompilerParams(
            dimension_semantics=("parallel",)),
    )(x_rows, w_toe)

    # Fold training-mode batch statistics (biased variance) into scale/bias and
    # apply affine + ReLU fused with the NCHW transpose in one XLA epilogue.
    count = jnp.float32(n * h_out * w_out)
    s = stats.reshape(n, 2, w_out, c_out).sum(axis=(0, 2))  # (2, C_out)
    mean = s[0] / count
    var = s[1] / count - mean * mean
    scale = gamma.astype(jnp.float32) * jax.lax.rsqrt(var + eps)
    bias = beta.astype(jnp.float32) - mean * scale

    y = y_rows.reshape(n, h_out, w_out, c_out)
    out = jnp.maximum(y * scale + bias, 0.0)
    return jnp.transpose(out, (0, 3, 1, 2))  # back to NCHW


def _reference_forward(x_nchw, w_oihw, gamma, beta, eps=1e-5):
    """Pure-JAX reference (f32 conv + train-mode BN + ReLU) for validation."""
    y = jax.lax.conv_general_dilated(
        x_nchw, w_oihw, window_strides=(STRIDE, STRIDE),
        padding=((PAD, PAD), (PAD, PAD)),
        dimension_numbers=("NCHW", "OIHW", "NCHW"),
        precision=jax.lax.Precision.HIGHEST)
    mean = y.mean(axis=(0, 2, 3), keepdims=True)
    var = y.var(axis=(0, 2, 3), keepdims=True)
    y = (y - mean) * jax.lax.rsqrt(var + eps)
    y = y * gamma.reshape(1, -1, 1, 1) + beta.reshape(1, -1, 1, 1)
    return jnp.maximum(y, 0.0)


if __name__ == "__main__":
    key = jax.random.PRNGKey(0)
    k1, k2, k3, k4 = jax.random.split(key, 4)

    N, C_IN, C_OUT, H, W = 2, 4, 8, 16, 16
    x = jax.random.normal(k1, (N, C_IN, H, W), dtype=jnp.float32)
    w = 0.1 * jax.random.normal(k2, (C_OUT, C_IN, KH, KW), dtype=jnp.float32)
    gamma = 1.0 + 0.1 * jax.random.normal(k3, (C_OUT,), dtype=jnp.float32)
    beta = 0.1 * jax.random.normal(k4, (C_OUT,), dtype=jnp.float32)

    out = basic_conv_forward(x, w, gamma, beta)
    jax.block_until_ready(out)

    # Reference computed from the bf16-rounded inputs the kernel consumes; the
    # kernel accumulates in f32, so only accumulation-order noise remains.
    x_q = x.astype(jnp.bfloat16).astype(jnp.float32)
    w_q = w.astype(jnp.bfloat16).astype(jnp.float32)
    ref = _reference_forward(x_q, w_q, gamma, beta)

    assert out.shape == (N, C_OUT, H, W)
    assert jnp.allclose(out, ref, rtol=1e-3, atol=1e-3), "mismatch vs reference"

    print("KERNEL_OK")
</pallas_src>

<mosaic_0001>
module attributes {stable_mosaic.version = 11 : i64} {
  func.func @_conv_stats_kernel(%arg0: i32, %arg1: memref<16x64xbf16, #tpu.memory_space<vmem>>, %arg2: memref<3x64x128xbf16, #tpu.memory_space<vmem>>, %arg3: memref<16x128xf32, #tpu.memory_space<vmem>>, %arg4: memref<1x2x128xf32, #tpu.memory_space<vmem>>, %arg5: memref<18x64xf32, #tpu.memory_space<vmem>>) attributes {dimension_semantics = [#tpu.dimension_semantics<parallel>], iteration_bounds = array<i64: 2>, scalar_prefetch = 0 : i64, scratch_operands = 1 : i64, tpu.core_type = #tpu.core_type<tc>, window_params = [{transform_indices = @transform_0, window_bounds = array<i64: 16, 64>}, {pipeline_mode = #tpu.pipeline_mode<synchronous>, transform_indices = @transform_1, window_bounds = array<i64: 3, 64, 128>}, {transform_indices = @transform_2, window_bounds = array<i64: 16, 128>}, {transform_indices = @transform_3, window_bounds = array<i64: 1, 2, 128>}]} {
    %cst = arith.constant 0.000000e+00 : f32
    %0 = vector.broadcast %cst : f32 to vector<1x64xf32>
    %c0 = arith.constant 0 : index
    %c0_0 = arith.constant 0 : index
    %1 = vector.load %arg5[%c0, %c0_0] : memref<18x64xf32, #tpu.memory_space<vmem>>, vector<1x64xf32>
    tpu.vector_store %arg5[%c0, %c0_0], %0 {strides = array<i32>} : memref<18x64xf32, #tpu.memory_space<vmem>>, vector<1x64xf32>,
    %cst_1 = arith.constant 0.000000e+00 : f32
    %2 = vector.broadcast %cst_1 : f32 to vector<1x64xf32>
    %c17 = arith.constant 17 : index
    %c0_2 = arith.constant 0 : index
    %3 = vector.load %arg5[%c17, %c0_2] : memref<18x64xf32, #tpu.memory_space<vmem>>, vector<1x64xf32>
    tpu.vector_store %arg5[%c17, %c0_2], %2 {strides = array<i32>} : memref<18x64xf32, #tpu.memory_space<vmem>>, vector<1x64xf32>,
    %c0_3 = arith.constant 0 : index
    %c0_4 = arith.constant 0 : index
    %4 = vector.load %arg1[%c0_3, %c0_4] : memref<16x64xbf16, #tpu.memory_space<vmem>>, vector<16x64xbf16>
    %5 = arith.extf %4 : vector<16x64xbf16> to vector<16x64xf32>
    %c1 = arith.constant 1 : index
    %c0_5 = arith.constant 0 : index
    %6 = vector.load %arg5[%c1, %c0_5] : memref<18x64xf32, #tpu.memory_space<vmem>>, vector<16x64xf32>
    tpu.vector_store %arg5[%c1, %c0_5], %5 {strides = array<i32>} : memref<18x64xf32, #tpu.memory_space<vmem>>, vector<16x64xf32>,
    %cst_6 = arith.constant 0.000000e+00 : f32
    %7 = vector.broadcast %cst_6 : f32 to vector<16x128xf32>
    %c0_7 = arith.constant 0 : index
    %c0_8 = arith.constant 0 : index
    %8 = vector.load %arg5[%c0_7, %c0_8] : memref<18x64xf32, #tpu.memory_space<vmem>>, vector<16x64xf32>
    %9 = arith.truncf %8 : vector<16x64xf32> to vector<16x64xbf16>
    %c0_9 = arith.constant 0 : index
    %c0_10 = arith.constant 0 : index
    %c0_11 = arith.constant 0 : index
    %10 = vector.load %arg2[%c0_9, %c0_10, %c0_11] : memref<3x64x128xbf16, #tpu.memory_space<vmem>>, vector<1x64x128xbf16>
    %11 = vector.shape_cast %10 : vector<1x64x128xbf16> to vector<64x128xbf16>
    %cst_12 = arith.constant dense<0.000000e+00> : vector<16x128xf32>
    %12 = tpu.matmul %9, %11, %cst_12 {dimension_numbers = #tpu.dot_dimension_numbers<[1], [0], [0], [1], [0, 0, 1, 1], [], []>} : vector<16x64xbf16>, vector<64x128xbf16>, vector<16x128xf32> -> vector<16x128xf32>
    %13 = arith.addf %7, %12 : vector<16x128xf32>
    %c1_13 = arith.constant 1 : index
    %c0_14 = arith.constant 0 : index
    %14 = vector.load %arg5[%c1_13, %c0_14] : memref<18x64xf32, #tpu.memory_space<vmem>>, vector<16x64xf32>
    %15 = arith.truncf %14 : vector<16x64xf32> to vector<16x64xbf16>
    %c1_15 = arith.constant 1 : index
    %c0_16 = arith.constant 0 : index
    %c0_17 = arith.constant 0 : index
    %16 = vector.load %arg2[%c1_15, %c0_16, %c0_17] : memref<3x64x128xbf16, #tpu.memory_space<vmem>>, vector<1x64x128xbf16>
    %17 = vector.shape_cast %16 : vector<1x64x128xbf16> to vector<64x128xbf16>
    %cst_18 = arith.constant dense<0.000000e+00> : vector<16x128xf32>
    %18 = tpu.matmul %15, %17, %cst_18 {dimension_numbers = #tpu.dot_dimension_numbers<[1], [0], [0], [1], [0, 0, 1, 1], [], []>} : vector<16x64xbf16>, vector<64x128xbf16>, vector<16x128xf32> -> vector<16x128xf32>
    %19 = arith.addf %13, %18 : vector<16x128xf32>
    %c2 = arith.constant 2 : index
    %c0_19 = arith.constant 0 : index
    %20 = vector.load %arg5[%c2, %c0_19] : memref<18x64xf32, #tpu.memory_space<vmem>>, vector<16x64xf32>
    %21 = arith.truncf %20 : vector<16x64xf32> to vector<16x64xbf16>
    %c2_20 = arith.constant 2 : index
    %c0_21 = arith.constant 0 : index
    %c0_22 = arith.constant 0 : index
    %22 = vector.load %arg2[%c2_20, %c0_21, %c0_22] : memref<3x64x128xbf16, #tpu.memory_space<vmem>>, vector<1x64x128xbf16>
    %23 = vector.shape_cast %22 : vector<1x64x128xbf16> to vector<64x128xbf16>
    %cst_23 = arith.constant dense<0.000000e+00> : vector<16x128xf32>
    %24 = tpu.matmul %21, %23, %cst_23 {dimension_numbers = #tpu.dot_dimension_numbers<[1], [0], [0], [1], [0, 0, 1, 1], [], []>} : vector<16x64xbf16>, vector<64x128xbf16>, vector<16x128xf32> -> vector<16x128xf32>
    %25 = arith.addf %19, %24 : vector<16x128xf32>
    %c0_24 = arith.constant 0 : index
    %c0_25 = arith.constant 0 : index
    %26 = vector.load %arg3[%c0_24, %c0_25] : memref<16x128xf32, #tpu.memory_space<vmem>>, vector<16x128xf32>
    tpu.vector_store %arg3[%c0_24, %c0_25], %25 {strides = array<i32>} : memref<16x128xf32, #tpu.memory_space<vmem>>, vector<16x128xf32>,
    %cst_26 = arith.constant dense<0.000000e+00> : vector<128xf32>
    %27 = vector.multi_reduction <add>, %25, %cst_26 [0] : vector<16x128xf32> to vector<128xf32>
    %28 = vector.shape_cast %27 : vector<128xf32> to vector<1x128xf32>
    %29 = arith.mulf %25, %25 : vector<16x128xf32>
    %cst_27 = arith.constant dense<0.000000e+00> : vector<128xf32>
    %30 = vector.multi_reduction <add>, %29, %cst_27 [0] : vector<16x128xf32> to vector<128xf32>
    %31 = vector.shape_cast %30 : vector<128xf32> to vector<1x128xf32>
    %32 = tpu.concatenate %28, %31 in 0 : vector<1x128xf32>, vector<1x128xf32> -> vector<2x128xf32>
    %33 = vector.shape_cast %32 : vector<2x128xf32> to vector<1x2x128xf32>
    %c0_28 = arith.constant 0 : index
    %c0_29 = arith.constant 0 : index
    %c0_30 = arith.constant 0 : index
    %34 = vector.load %arg4[%c0_28, %c0_29, %c0_30] : memref<1x2x128xf32, #tpu.memory_space<vmem>>, vector<1x2x128xf32>
    tpu.vector_store %arg4[%c0_28, %c0_29, %c0_30], %33 {strides = array<i32>} : memref<1x2x128xf32, #tpu.memory_space<vmem>>, vector<1x2x128xf32>,
    return
  }
  func.func @transform_0(%arg0: i32) -> (i32, i32) {
    %c0_i32 = arith.constant 0 : i32
    %c0_i32_0 = arith.constant 0 : i32
    return %arg0, %c0_i32 : i32, i32
  }
  func.func @transform_1(%arg0: i32) -> (i32, i32, i32) {
    %c0_i32 = arith.constant 0 : i32
    %c0_i32_0 = arith.constant 0 : i32
    %c0_i32_1 = arith.constant 0 : i32
    %c0_i32_2 = arith.constant 0 : i32
    return %c0_i32, %c0_i32_0, %c0_i32_1 : i32, i32, i32
  }
  func.func @transform_2(%arg0: i32) -> (i32, i32) {
    %c0_i32 = arith.constant 0 : i32
    %c0_i32_0 = arith.constant 0 : i32
    return %arg0, %c0_i32 : i32, i32
  }
  func.func @transform_3(%arg0: i32) -> (i32, i32, i32) {
    %c0_i32 = arith.constant 0 : i32
    %c0_i32_0 = arith.constant 0 : i32
    %c0_i32_1 = arith.constant 0 : i32
    return %arg0, %c0_i32, %c0_i32_0 : i32, i32, i32
  }
}

</mosaic_0001>

<bundles_post_ra>
// kernel: basic_conv_forward.1
= control target key start
LH: loop header
LB: loop body
LE: loop exit
PB: predicated region body
PF: predicated region fallthrough
CT: control target
= control target key end

     0   :  { %s597_s12 = smov 0   ;;  %s667_s0 = inlined_call_operand.vmem [shape: bf16[32,64], index: 0, kind: input, shape index: {}]   ;;  %s668_s1 = inlined_call_operand.vmem [shape: bf16[3,64,128], index: 1, kind: input, shape index: {}]   ;;  %s669_s2 = inlined_call_operand.vmem [shape: f32[32,128], index: 2, kind: output, shape index: {0}]   ;;  %s670_s3 = inlined_call_operand.vmem [shape: f32[2,2,128], index: 3, kind: output, shape index: {1}]  }
   0x1 LB: > { %s603_s13 = sadd.s32 4294967295, %s574_s12   ;;  %p468_p0 = scmp.ge.s32.totalorder %s574_s12, 1  ;;  %s574_s12 = sphi %s597_s12, %s14_s12  }
   0x2   : > { %p141_p1 = scmp.lt.s32.totalorder %s574_s12, 3 }
   0x4   : > { %p142_p2 = pnand %p468_p0, %p141_p1 }
   0x5   : > { %s469_s20 = sshll.u32 (!%p142_p2), %s603_s13, 1  ;;  %p181_p4 = scmp.lt.s32.totalorder (!%p142_p2), %s603_s13, 1 }
   0x6   : > { %145 = sbr.rel (%p142_p2) target bundleno = 190 (0xbe), region = 28  ;;  %p170_p3 = scmp.lt.s32.totalorder (!%p142_p2), %s469_s20, 3 }
   0xb   : > { %v550_v0 = vld [vmem:[%s668_s1 + $0x38] sm:$0xff]  ;;  %vm186_vm0 = vcmask 516096   ;;  %v549_v3 = vld [vmem:[%s668_s1 + $0x30] sm:$0xff]  ;;  %v576_v5 = vmov 0.0   ;;  %s672_s20 = smov (!%p170_p3, %s469_s20), 3  ;;  %v548_v7 = vld [vmem:[%s668_s1 + $0x28] sm:$0xff] }
   0xc   : > { %v546_v1 = vld [vmem:[%s668_s1 + $0x18] sm:$0xff]  ;;  %250 = vmatpush.bf16.msra.mxu0 %v550_v0  ;;  %v545_v4 = vld [vmem:[%s668_s1 + $0x10] sm:$0xff]  ;;  %187 = vst.msk [vmem:[#allocation2] sm:$0x1] %vm186_vm0, %v576_v5  ;;  %s470_s27 = sshll.u32 %s672_s20, 2  ;;  %v544_v8 = vld [vmem:[%s668_s1 + $0x8] sm:$0xff] }
   0xd   : > { %v554_v2 = vld [vmem:[%s668_s1 + $0x58] sm:$0xff]  ;;  %291 = vmatpush.bf16.msra.mxu1 %v546_v1  ;;  %v553_v6 = vld [vmem:[%s668_s1 + $0x50] sm:$0xff]  ;;  %188 = vst.msk [vmem:[#allocation2 + $0x11] sm:$0x1] %vm186_vm0, %v576_v5  ;;  %s173_s7 = scalar_lea.vmem %s667_s0, %s470_s27  ;;  %v552_v9 = vld [vmem:[%s668_s1 + $0x48] sm:$0xff]  ;;  %vm193_vm1 = vcmask 523264  }
   0xe   : > { %344 = vmatpush.bf16.msra.mxu2 %v554_v2  ;;  %v556_v10 = vld [vmem:[%s173_s7] sm:$0xff]   ;;  %s472_s18 = sshll.u32 %s672_s20, 3  ;;  %s674_s13 = smov (!%p181_p4, %s603_s13), 1  ;;  %vm374_vm2 = vcmask 1040384  }
   0xf   : > { %v557_v11 = vunpack.c.l.bf16 %v556_v10  ;;  %v558_v12 = vunpack.c.h.bf16 %v556_v10  ;;  %v547_v13 = vld [vmem:[%s668_s1 + $0x20] sm:$0xff]  ;;  %s179_s22 = scalar_lea.vmem %s669_s2, %s472_s18  ;;  %s473_s20 = sshll.u32 %s674_s13, 1 }
  0x10   : > { %251 = vmatpush.bf16.msra.mxu0 %v549_v3  ;;  %v543_v14 = vld [vmem:[%s668_s1] sm:$0xff]  ;;  %s184_s25 = scalar_lea.vmem %s670_s3, %s473_s20 }
  0x11   : > { %292 = vmatpush.bf16.msra.mxu1 %v545_v4  ;;  %194 = vst.msk [vmem:[#allocation2 + $0x1] sm:$0xff] %vm193_vm1, %v557_v11  ;;  %v551_v15 = vld [vmem:[%s668_s1 + $0x40] sm:$0xff] }
  0x12   : > { %345 = vmatpush.bf16.msra.mxu2 %v553_v6  ;;  %195 = vst.msk [vmem:[#allocation2 + $0x9] sm:$0xff] %vm193_vm1, %v558_v12 }
  0x14   : > { %252 = vmatpush.bf16.msra.mxu0 %v548_v7 }
  0x15   : > { %293 = vmatpush.bf16.msra.mxu1 %v544_v8 }
  0x16   : > { %346 = vmatpush.bf16.msra.mxu2 %v552_v9 }
  0x18   : > { %253 = vmatpush.bf16.msra.mxu0 %v547_v13  ;;  %v207_v16 = vld [vmem:[#allocation2 + $0x1] sm:$0xff] }
  0x19   : > { %294 = vmatpush.bf16.msra.mxu1 %v543_v14  ;;  %v196_v17 = vld [vmem:[#allocation2] sm:$0xff]  ;;  %v208_v18 = vld [vmem:[#allocation2 + $0x9] sm:$0xff] }
  0x1a   : > { %347 = vmatpush.bf16.msra.mxu2 %v551_v15  ;;  %v197_v19 = vld [vmem:[#allocation2 + $0x8] sm:$0xff]  ;;  %v209_v21 = vpack.c.bf16 %v208_v18, %v207_v16 }
  0x1b   : > { %v301_v20 = vld [vmem:[#allocation2 + $0x2] sm:$0xff]  ;;  %v198_v22 = vpack.c.bf16 %v197_v19, %v196_v17  ;;  %v302_v23 = vld [vmem:[#allocation2 + $0xa] sm:$0xff] }
  0x1c   : > { %v303_v24 = vpack.c.bf16 %v302_v23, %v301_v20  ;;  %498 = vmatmul.msk.bf16.vlgmr.msra.gmra.mxu0 %vm193_vm1, %v209_v21 }
  0x1d   : > { %515 = vmatmul.msk.bf16.vlgmr.msra.gmra.mxu1 %vm193_vm1, %v198_v22 }
  0x1e   : > { %540 = vmatmul.msk.bf16.vlgmr.msra.gmra.mxu2 %vm193_vm1, %v303_v24 }
  0x99   : > { %v255_v25 = vpop.f32.mrf.mxu0 }
  0x9a   : > { %v296_v26 = vpop.f32.mrf.mxu1 }
  0x9b   : > { %v297_v27 = vadd.f32 %v296_v26, %v255_v25 }
  0xa1   : > { %v349_v28 = vpop.f32.mrf.mxu2  ;;  %v257_v30 = vpop.f32.mrf.mxu0 }
  0xa2   : > { %v354_v29 = vadd.f32 %v349_v28, %v297_v27  ;;  %v298_v31 = vpop.f32.mrf.mxu1 }
  0xa3   : > { %v299_v32 = vadd.f32 %v298_v31, %v257_v30 }
  0xa4   : > { %356 = vst [vmem:[%s179_s22] sm:$0xff] %v354_v29  ;;  %v365_v35 = vmul.f32 %v354_v29, %v354_v29 }
  0xa9   : > { %v351_v33 = vpop.f32.mrf.mxu2 }
  0xaa   : > { %v355_v34 = vadd.f32 %v351_v33, %v299_v32 }
  0xac   : > { %357 = vst [vmem:[%s179_s22 + $0x8] sm:$0xff] %v355_v34  ;;  %v358_v36 = vadd.f32 %v355_v34, %v354_v29  ;;  %v366_v37 = vmul.f32 %v355_v34, %v355_v34 }
  0xae   : > { %v359_v38 = vrot.slane %v358_v36, 4  ;;  %v367_v39 = vadd.f32 %v366_v37, %v365_v35 }
  0xb0   : > { %v360_v40 = vadd.f32 %v359_v38, %v358_v36  ;;  %v368_v41 = vrot.slane %v367_v39, 4 }
  0xb2   : > { %v361_v42 = vrot.slane %v360_v40, 2  ;;  %v369_v43 = vadd.f32 %v368_v41, %v367_v39 }
  0xb4   : > { %v362_v44 = vadd.f32 %v361_v42, %v360_v40  ;;  %v370_v45 = vrot.slane %v369_v43, 2 }
  0xb6   : > { %v363_v46 = vrot.slane %v362_v44, 1  ;;  %v371_v47 = vadd.f32 %v370_v45, %v369_v43 }
  0xb8   : > { %v372_v48 = vrot.slane %v371_v47, 1  ;;  %v364_v49 = vadd.f32 %v363_v46, %v362_v44 }
  0xba   : > { %v373_v50 = vadd.f32 %v372_v48, %v371_v47 }
  0xbc   : > { %v375_v51 = vsel %vm374_vm2, %v364_v49, %v373_v50 }
  0xbd   : > { %376 = vst [vmem:[%s184_s25] sm:$0x3] %v375_v51 }
  0xbe PF: > { %s14_s12 = sadd.s32 1, %s574_s12  }
  0xbf   : > { %p11_p5 = scmp.ge.s32.totalorder %s14_s12, 4  }
  0xc1   :  { %13 = sbr.rel (!%p11_p5) target bundleno = 1 (0x1), region = 72 }

</bundles_post_ra>
